<compile_context>
chip_gen: v6e
topology: v6e:2x2x1
jax: 0.10.0
libtpu: 0.0.40
codegen_flags: <defaults>
</compile_context>

<pallas_src>
import functools

import jax
import jax.numpy as jnp
from jax.experimental import pallas as pl
from jax.experimental.pallas import tpu as pltpu


def _round_up(x, m):
    return ((x + m - 1) // m) * m


def _chip_config():
    """Returns (vmem_limit_bytes, plain_block_bytes, folded_block_bytes, has_bf16_vpu, num_tc)."""
    vmem_cap = None
    try:
        vmem_cap = int(pltpu.get_tpu_info().vmem_capacity_bytes)
    except Exception:
        vmem_cap = None
    kind = ""
    try:
        kind = jax.devices()[0].device_kind.lower()
    except Exception:
        kind = ""
    old_gen = any(t in kind for t in ("v2", "v3", "v4", "v5"))
    has_bf16 = not old_gen                      # native bf16 VPU/EUP on v6e / v7x / newer
    v7x_class = ((vmem_cap is not None and vmem_cap <= (80 << 20))
                 or "v7" in kind or "7x" in kind)
    if v7x_class:
        # 64 MiB VMEM per TensorCore, 2 TensorCores per chip: smaller blocks + headroom.
        return (40 << 20), (4 << 20), (2 << 20), has_bf16, 2
    # v5e / v6e: 128 MiB VMEM, 1 TensorCore: bigger blocks amortize per-step overhead.
    return (64 << 20), (8 << 20), (4 << 20), has_bf16, 1


def _getex_kernel(x_ref, o_ref, *, seg, fold, compute_dtype):
    """out = exp(x - segment_max(x)) over a (tile_r, L) lane-dense block.

    fold == 1: one segment per row (plain last-dim reduction of width L).
    fold >  1: each 128-wide row packs `fold` logical rows of width `seg`; the per-segment
               max is computed with a statically-masked butterfly of XLU lane rotations, so
               the DMAs, stores and the subtract/exp all run at full 128-lane density.
    """
    xc = x_ref[...].astype(compute_dtype)

    if fold == 1:
        m = jnp.max(xc, axis=-1, keepdims=True)
        o_ref[...] = jnp.exp(xc - m).astype(o_ref.dtype)
        return

    L = xc.shape[-1]                 # == fold * seg == 128
    lane_axis = xc.ndim - 1          # pltpu.roll requires a non-negative axis

    # Per-lane position inside its segment: compile-time pattern, built once as a
    # (1, L) row (no full-tile materialization) and reused by every butterfly step.
    lane_pos = jax.lax.broadcasted_iota(jnp.int32, (1, L), dimension=1) % seg

    # Segmented butterfly all-reduce (max), ascending shifts 1, 2, ..., seg/2.
    # pltpu.roll follows jnp.roll semantics:
    #   roll(x, s)[l]     == x[(l - s) % L]   (left  neighbour)
    #   roll(x, L - s)[l] == x[(l + s) % L]   (right neighbour)
    # A neighbour is accepted only if it lies in the same seg-wide segment; both guards are
    # compile-time functions of the lane index.  max is exact in any dtype, so the butterfly
    # runs in the compute dtype (bf16 halves the vreg / roll count on v6e / v7x).
    m = xc
    s = 1
    while s < seg:
        take_left = lane_pos >= s                # lane l - s stays inside the segment
        take_right = lane_pos < (seg - s)        # lane l + s stays inside the segment
        left = pltpu.roll(m, s, lane_axis)
        right = pltpu.roll(m, L - s, lane_axis)
        m = jnp.where(take_left, jnp.maximum(m, left), m)
        m = jnp.where(take_right, jnp.maximum(m, right), m)
        s *= 2

    o_ref[...] = jnp.exp(xc - m).astype(o_ref.dtype)


def _pick_tile_rows(rows, lane_width, itemsize, target_block_bytes, num_tc):
    """Row tile from the VMEM budget, multiple of the dtype sublane pack, with enough grid
    steps to feed every TensorCore and overlap the pipeline (but never < ~1 MiB blocks)."""
    pack = max(8, 32 // max(1, itemsize))        # sublane pack: f32 8, bf16 16, int8/fp8 32
    bytes_per_row = max(1, lane_width * itemsize)
    # TODO(synk): if a single packed row group (pack * bytes_per_row) ever exceeds the VMEM
    # budget (absurdly long last dim), a two-pass D-tiled max would be needed.
    tile = max(pack, (target_block_bytes // bytes_per_row) // pack * pack)
    tile = min(tile, _round_up(rows, pack))

    min_block_rows = max(pack, ((1 << 20) // bytes_per_row) // pack * pack)
    target_steps = 2 * max(1, num_tc)            # >=2 per TC on v7x, >=2 on 1-TC parts
    useful_steps = min(target_steps, max(1, rows // min_block_rows))
    if num_tc >= 2:
        # Even multiple of the core count so no TensorCore idles on the tail step.
        useful_steps = (useful_steps // num_tc) * num_tc
    if useful_steps > 1 and pl.cdiv(rows, tile) < useful_steps:
        tile = max(pack, _round_up(pl.cdiv(rows, useful_steps), pack))
    return tile


def _quant_getex_forward(x, use_input_quant=False):
    if use_input_quant:
        # TODO(synk): quantizer_ex (UniformQuantizer / LogSqrt2Quantizer) source is not part
        # of the provided module; only the exp(x - max) hot path is implemented.
        raise NotImplementedError("quantizer_ex not defined in provided module source")

    if x.ndim == 0:
        raise ValueError("QuantGetex expects at least a 1-D input")
    if x.size == 0:
        return x

    orig_shape = x.shape
    orig_dtype = x.dtype
    D = int(orig_shape[-1])
    R = 1
    for s in orig_shape[:-1]:
        R *= int(s)
    R = max(R, 1)

    itemsize = jnp.dtype(orig_dtype).itemsize
    vmem_limit, plain_blk, folded_blk, has_bf16, num_tc = _chip_config()
    compute_dtype = (jnp.bfloat16
                     if (orig_dtype == jnp.bfloat16 and has_bf16)
                     else jnp.float32)

    # Lane folding for small last dims: pack 128//D consecutive logical rows into one
    # lane-dense 128-wide row (a pure metadata reshape of the row-major array).
    fold = 1
    if D < 128 and 128 % D == 0:
        f = 128 // D
        if f >= 2 and R % f == 0:
            fold = f
        # TODO(synk): when R % f != 0, fold the (R // f) * f prefix and run the ragged
        # remainder through a second narrow call instead of giving up on folding entirely.
    rows = R // fold
    lane_width = D * fold
    x2d = x.reshape(rows, lane_width)

    target_block = folded_blk if fold > 1 else plain_blk
    tile_r = _pick_tile_rows(rows, lane_width, itemsize, target_block, num_tc)
    grid = (pl.cdiv(rows, tile_r),)  # partial tail block: rows are independent and
                                     # out-of-range rows are never written back.

    kernel = functools.partial(_getex_kernel, seg=D, fold=fold,
                               compute_dtype=compute_dtype)

    out2d = pl.pallas_call(
        kernel,
        out_shape=jax.ShapeDtypeStruct((rows, lane_width), orig_dtype),
        grid_spec=pltpu.PrefetchScalarGridSpec(
            num_scalar_prefetch=0,
            grid=grid,
            in_specs=[pl.BlockSpec((tile_r, lane_width), lambda i: (i, 0))],
            out_specs=pl.BlockSpec((tile_r, lane_width), lambda i: (i, 0)),
        ),
        compiler_params=pltpu.CompilerParams(
            dimension_semantics=("parallel",),
            vmem_limit_bytes=vmem_limit,
        ),
        cost_estimate=pl.CostEstimate(
            flops=3 * R * D,
            transcendentals=R * D,
            bytes_accessed=2 * R * D * itemsize,
        ),
    )(x2d)

    return out2d.reshape(orig_shape)


quant_getex_forward = jax.jit(_quant_getex_forward, static_argnames=("use_input_quant",))


if __name__ == "__main__":
    key = jax.random.PRNGKey(0)
    k1, k2, k3 = jax.random.split(key, 3)

    # 1) Attention-score-like input (small last dim D=16): lane-folded 128-wide path (f=8).
    x1 = jax.random.normal(k1, (2, 4, 16, 16), dtype=jnp.float32)
    out1 = jax.block_until_ready(quant_getex_forward(x1))
    ref1 = jnp.exp(x1 - jnp.max(x1, axis=-1, keepdims=True))
    assert out1.shape == x1.shape and out1.dtype == x1.dtype
    assert jnp.allclose(out1, ref1, atol=1e-6, rtol=1e-6)

    # 2) Non-128-divisible last dim (96) + row count leaving a partial tail block:
    #    exercises the unfolded path with edge-block masking (no padding copies).
    x2 = jax.random.normal(k2, (5, 7, 96), dtype=jnp.float32)
    out2 = jax.block_until_ready(quant_getex_forward(x2))
    ref2 = jnp.exp(x2 - jnp.max(x2, axis=-1, keepdims=True))
    assert out2.shape == x2.shape and out2.dtype == x2.dtype
    assert jnp.allclose(out2, ref2, atol=1e-6, rtol=1e-6)

    # 3) D=64 (fold=2) with bf16 I/O: bf16-native butterfly + subtract/exp on v6e/v7x,
    #    f32 compute on older chips.
    x3 = jax.random.normal(k3, (2, 8, 64), dtype=jnp.bfloat16)
    out3 = jax.block_until_ready(quant_getex_forward(x3))
    x3f = x3.astype(jnp.float32)
    ref3 = jnp.exp(x3f - jnp.max(x3f, axis=-1, keepdims=True)).astype(jnp.bfloat16)
    assert out3.shape == x3.shape and out3.dtype == x3.dtype
    assert jnp.allclose(out3.astype(jnp.float32), ref3.astype(jnp.float32),
                        atol=5e-2, rtol=5e-2)

    print("KERNEL_OK")
</pallas_src>

<mosaic_0001>
module attributes {stable_mosaic.version = 11 : i64} {
  func.func @_getex_kernel(%arg0: i32, %arg1: memref<16x128xf32, #tpu.memory_space<vmem>>, %arg2: memref<16x128xf32, #tpu.memory_space<vmem>>) attributes {dimension_semantics = [#tpu.dimension_semantics<parallel>], iteration_bounds = array<i64: 1>, scalar_prefetch = 0 : i64, scratch_operands = 0 : i64, tpu.core_type = #tpu.core_type<tc>, window_params = [{transform_indices = @transform_0, window_bounds = array<i64: 16, 128>}, {transform_indices = @transform_1, window_bounds = array<i64: 16, 128>}]} {
    %c0 = arith.constant 0 : index
    %c0_0 = arith.constant 0 : index
    %0 = vector.load %arg1[%c0, %c0_0] : memref<16x128xf32, #tpu.memory_space<vmem>>, vector<16x128xf32>
    %1 = tpu.iota {dimensions = array<i32: 1>} : vector<1x128xi32>
    %c16_i32 = arith.constant 16 : i32
    %c0_i32 = arith.constant 0 : i32
    %2 = arith.cmpi eq, %c16_i32, %c0_i32 : i32
    %c1_i32 = arith.constant 1 : i32
    %3 = arith.select %2, %c1_i32, %c16_i32 : i32
    %4 = vector.broadcast %3 : i32 to vector<1x128xi32>
    %5 = arith.remsi %1, %4 : vector<1x128xi32>
    %c0_i32_1 = arith.constant 0 : i32
    %6 = vector.broadcast %c0_i32_1 : i32 to vector<1x128xi32>
    %7 = arith.cmpi ne, %5, %6 : vector<1x128xi32>
    %c0_i32_2 = arith.constant 0 : i32
    %8 = vector.broadcast %c0_i32_2 : i32 to vector<1x128xi32>
    %9 = arith.cmpi slt, %5, %8 : vector<1x128xi32>
    %c0_i32_3 = arith.constant 0 : i32
    %10 = arith.cmpi slt, %3, %c0_i32_3 : i32
    %11 = vector.broadcast %10 : i1 to vector<1x128xi1>
    %12 = vector.broadcast %11 : vector<1x128xi1> to vector<1x128xi1>
    %13 = arith.xori %9, %12 : vector<1x128xi1>
    %14 = arith.andi %13, %7 : vector<1x128xi1>
    %15 = vector.broadcast %3 : i32 to vector<1x128xi32>
    %16 = arith.addi %5, %15 : vector<1x128xi32>
    %17 = arith.select %14, %16, %5 : vector<1x128xi1>, vector<1x128xi32>
    %c1_i32_4 = arith.constant 1 : i32
    %18 = vector.broadcast %c1_i32_4 : i32 to vector<1x128xi32>
    %19 = arith.cmpi sge, %17, %18 : vector<1x128xi32>
    %c15_i32 = arith.constant 15 : i32
    %20 = vector.broadcast %c15_i32 : i32 to vector<1x128xi32>
    %21 = arith.cmpi slt, %17, %20 : vector<1x128xi32>
    %c1_i32_5 = arith.constant 1 : i32
    %22 = tpu.dynamic_rotate %0 by %c1_i32_5 dim 1 : vector<16x128xf32>, i32 -> vector<16x128xf32>
    %c127_i32 = arith.constant 127 : i32
    %23 = tpu.dynamic_rotate %0 by %c127_i32 dim 1 : vector<16x128xf32>, i32 -> vector<16x128xf32>
    %24 = arith.maximumf %0, %22 : vector<16x128xf32>
    %25 = vector.shape_cast %19 : vector<1x128xi1> to vector<1x128xi1>
    %26 = vector.broadcast %25 : vector<1x128xi1> to vector<16x128xi1>
    %27 = arith.select %26, %24, %0 : vector<16x128xi1>, vector<16x128xf32>
    %28 = arith.maximumf %27, %23 : vector<16x128xf32>
    %29 = vector.shape_cast %21 : vector<1x128xi1> to vector<1x128xi1>
    %30 = vector.broadcast %29 : vector<1x128xi1> to vector<16x128xi1>
    %31 = arith.select %30, %28, %27 : vector<16x128xi1>, vector<16x128xf32>
    %c2_i32 = arith.constant 2 : i32
    %32 = vector.broadcast %c2_i32 : i32 to vector<1x128xi32>
    %33 = arith.cmpi sge, %17, %32 : vector<1x128xi32>
    %c14_i32 = arith.constant 14 : i32
    %34 = vector.broadcast %c14_i32 : i32 to vector<1x128xi32>
    %35 = arith.cmpi slt, %17, %34 : vector<1x128xi32>
    %c2_i32_6 = arith.constant 2 : i32
    %36 = tpu.dynamic_rotate %31 by %c2_i32_6 dim 1 : vector<16x128xf32>, i32 -> vector<16x128xf32>
    %c126_i32 = arith.constant 126 : i32
    %37 = tpu.dynamic_rotate %31 by %c126_i32 dim 1 : vector<16x128xf32>, i32 -> vector<16x128xf32>
    %38 = arith.maximumf %31, %36 : vector<16x128xf32>
    %39 = vector.shape_cast %33 : vector<1x128xi1> to vector<1x128xi1>
    %40 = vector.broadcast %39 : vector<1x128xi1> to vector<16x128xi1>
    %41 = arith.select %40, %38, %31 : vector<16x128xi1>, vector<16x128xf32>
    %42 = arith.maximumf %41, %37 : vector<16x128xf32>
    %43 = vector.shape_cast %35 : vector<1x128xi1> to vector<1x128xi1>
    %44 = vector.broadcast %43 : vector<1x128xi1> to vector<16x128xi1>
    %45 = arith.select %44, %42, %41 : vector<16x128xi1>, vector<16x128xf32>
    %c4_i32 = arith.constant 4 : i32
    %46 = vector.broadcast %c4_i32 : i32 to vector<1x128xi32>
    %47 = arith.cmpi sge, %17, %46 : vector<1x128xi32>
    %c12_i32 = arith.constant 12 : i32
    %48 = vector.broadcast %c12_i32 : i32 to vector<1x128xi32>
    %49 = arith.cmpi slt, %17, %48 : vector<1x128xi32>
    %c4_i32_7 = arith.constant 4 : i32
    %50 = tpu.dynamic_rotate %45 by %c4_i32_7 dim 1 : vector<16x128xf32>, i32 -> vector<16x128xf32>
    %c124_i32 = arith.constant 124 : i32
    %51 = tpu.dynamic_rotate %45 by %c124_i32 dim 1 : vector<16x128xf32>, i32 -> vector<16x128xf32>
    %52 = arith.maximumf %45, %50 : vector<16x128xf32>
    %53 = vector.shape_cast %47 : vector<1x128xi1> to vector<1x128xi1>
    %54 = vector.broadcast %53 : vector<1x128xi1> to vector<16x128xi1>
    %55 = arith.select %54, %52, %45 : vector<16x128xi1>, vector<16x128xf32>
    %56 = arith.maximumf %55, %51 : vector<16x128xf32>
    %57 = vector.shape_cast %49 : vector<1x128xi1> to vector<1x128xi1>
    %58 = vector.broadcast %57 : vector<1x128xi1> to vector<16x128xi1>
    %59 = arith.select %58, %56, %55 : vector<16x128xi1>, vector<16x128xf32>
    %c8_i32 = arith.constant 8 : i32
    %60 = vector.broadcast %c8_i32 : i32 to vector<1x128xi32>
    %61 = arith.cmpi sge, %17, %60 : vector<1x128xi32>
    %c8_i32_8 = arith.constant 8 : i32
    %62 = vector.broadcast %c8_i32_8 : i32 to vector<1x128xi32>
    %63 = arith.cmpi slt, %17, %62 : vector<1x128xi32>
    %c8_i32_9 = arith.constant 8 : i32
    %64 = tpu.dynamic_rotate %59 by %c8_i32_9 dim 1 : vector<16x128xf32>, i32 -> vector<16x128xf32>
    %c120_i32 = arith.constant 120 : i32
    %65 = tpu.dynamic_rotate %59 by %c120_i32 dim 1 : vector<16x128xf32>, i32 -> vector<16x128xf32>
    %66 = arith.maximumf %59, %64 : vector<16x128xf32>
    %67 = vector.shape_cast %61 : vector<1x128xi1> to vector<1x128xi1>
    %68 = vector.broadcast %67 : vector<1x128xi1> to vector<16x128xi1>
    %69 = arith.select %68, %66, %59 : vector<16x128xi1>, vector<16x128xf32>
    %70 = arith.maximumf %69, %65 : vector<16x128xf32>
    %71 = vector.shape_cast %63 : vector<1x128xi1> to vector<1x128xi1>
    %72 = vector.broadcast %71 : vector<1x128xi1> to vector<16x128xi1>
    %73 = arith.select %72, %70, %69 : vector<16x128xi1>, vector<16x128xf32>
    %74 = arith.subf %0, %73 : vector<16x128xf32>
    %75 = math.exp %74 : vector<16x128xf32>
    %c0_10 = arith.constant 0 : index
    %c0_11 = arith.constant 0 : index
    %76 = vector.load %arg2[%c0_10, %c0_11] : memref<16x128xf32, #tpu.memory_space<vmem>>, vector<16x128xf32>
    tpu.vector_store %arg2[%c0_10, %c0_11], %75 {strides = array<i32>} : memref<16x128xf32, #tpu.memory_space<vmem>>, vector<16x128xf32>,
    return
  }
  func.func @transform_0(%arg0: i32) -> (i32, i32) {
    %c0_i32 = arith.constant 0 : i32
    %c0_i32_0 = arith.constant 0 : i32
    return %arg0, %c0_i32 : i32, i32
  }
  func.func @transform_1(%arg0: i32) -> (i32, i32) {
    %c0_i32 = arith.constant 0 : i32
    %c0_i32_0 = arith.constant 0 : i32
    return %arg0, %c0_i32 : i32, i32
  }
}

</mosaic_0001>

<bundles_post_ra>
// kernel: _quant_getex_forward.1
= control target key start
LH: loop header
LB: loop body
LE: loop exit
PB: predicated region body
PF: predicated region fallthrough
CT: control target
= control target key end

     0   :  { %s136_s8 = smov 1   ;;  %s137_s9 = smov 127   ;;  %v10_v2 = vlaneseq  ;;  %s190_s0 = inlined_call_operand.vmem [shape: f32[16,128], index: 0, kind: input, shape index: {}]   ;;  %s191_s1 = inlined_call_operand.vmem [shape: f32[16,128], index: 1, kind: output, shape index: {}]  }
   0x1   :  { %v157_v0 = vld [vmem:[%s190_s0] sm:$0xff]  ;;  %v164_v1 = vld [vmem:[%s190_s0 + $0x8] sm:$0xff]  ;;  %s138_s0 = smov 2   ;;  %s139_s12 = smov 126  }
   0x2   :  { %26 = vrot.lane.b32.xlu0 %v157_v0, %s136_s8  ;;  %30 = vrot.lane.b32.xlu1 %v157_v0, %s137_s9  ;;  %v11_v3 = vand.u32 127, %v10_v2  ;;  %s140_s13 = smov 4   ;;  %s141_s14 = smov 124  }
   0x3   :  { %s142_s15 = smov 8   ;;  %s143_s16 = smov 120  }
   0x4   :  { %v168_v4 = vand.u32 15, %v11_v3 }
   0x6   :  { %28 = vrot.lane.b32.xlu0 %v164_v1, %s136_s8  ;;  %32 = vrot.lane.b32.xlu1 %v164_v1, %s137_s9  ;;  %vm24_vm0 = vcmp.ge.s32.totalorder %v168_v4, 1  ;;  %vm25_vm1 = vcmp.lt.s32.totalorder %v168_v4, 15  ;;  %vm46_vm2 = vcmp.ge.s32.totalorder %v168_v4, 2  ;;  %vm47_vm3 = vcmp.lt.s32.totalorder %v168_v4, 14 }
   0x7   :  { %vm68_vm4 = vcmp.ge.s32.totalorder %v168_v4, 4  ;;  %vm69_vm5 = vcmp.lt.s32.totalorder %v168_v4, 12  ;;  %vm90_vm6 = vcmp.ge.s32.totalorder %v168_v4, 8  ;;  %vm91_vm7 = vcmp.lt.s32.totalorder %v168_v4, 8 }
  0x74   :  { %v27_v5 = vpop.permute.xlu0 %26  ;;  %v31_v6 = vpop.permute.xlu1 %30 }
  0x75   :  { %v34_v7 = vmax.f32 %v157_v0, %v27_v5 }
  0x77   :  { %v38_v8 = vsel %vm24_vm0, %v34_v7, %v157_v0 }
  0x78   :  { %v40_v9 = vmax.f32 %v38_v8, %v31_v6  ;;  %v29_v10 = vpop.permute.xlu0 %28  ;;  %v33_v12 = vpop.permute.xlu1 %32 }
  0x79   :  { %v35_v11 = vmax.f32 %v164_v1, %v29_v10 }
  0x7a   :  { %v44_v13 = vsel %vm25_vm1, %v40_v9, %v38_v8 }
  0x7b   :  { %v39_v14 = vsel %vm24_vm0, %v35_v11, %v164_v1  ;;  %48 = vrot.lane.b32.xlu0 %v44_v13, %s138_s0 }
  0x7c   :  { %v41_v15 = vmax.f32 %v39_v14, %v33_v12 }
  0x7e   :  { %v45_v16 = vsel %vm25_vm1, %v41_v15, %v39_v14 }
  0x7f   :  { %52 = vrot.lane.b32.xlu0 %v44_v13, %s139_s12  ;;  %50 = vrot.lane.b32.xlu1 %v45_v16, %s138_s0 }
  0x83   :  { %54 = vrot.lane.b32.xlu1 %v45_v16, %s139_s12 }
  0xed   :  { %v49_v17 = vpop.permute.xlu0 %48 }
  0xee   :  { %v56_v18 = vmax.f32 %v44_v13, %v49_v17 }
  0xf0   :  { %v60_v19 = vsel %vm46_vm2, %v56_v18, %v44_v13 }
  0xf1   :  { %v51_v20 = vpop.permute.xlu1 %50  ;;  %v53_v21 = vpop.permute.xlu0 %52 }
  0xf2   :  { %v57_v22 = vmax.f32 %v45_v16, %v51_v20  ;;  %v62_v23 = vmax.f32 %v60_v19, %v53_v21 }
  0xf4   :  { %v61_v24 = vsel %vm46_vm2, %v57_v22, %v45_v16  ;;  %v66_v25 = vsel %vm47_vm3, %v62_v23, %v60_v19 }
  0xf5   :  { %v55_v26 = vpop.permute.xlu1 %54  ;;  %70 = vrot.lane.b32.xlu0 %v66_v25, %s140_s13 }
  0xf6   :  { %v63_v27 = vmax.f32 %v61_v24, %v55_v26 }
  0xf8   :  { %v67_v28 = vsel %vm47_vm3, %v63_v27, %v61_v24 }
  0xf9   :  { %72 = vrot.lane.b32.xlu1 %v67_v28, %s140_s13  ;;  %74 = vrot.lane.b32.xlu0 %v66_v25, %s141_s14 }
  0xfd   :  { %76 = vrot.lane.b32.xlu1 %v67_v28, %s141_s14 }
 0x167   :  { %v71_v29 = vpop.permute.xlu0 %70 }
 0x168   :  { %v78_v30 = vmax.f32 %v66_v25, %v71_v29 }
 0x16a   :  { %v82_v31 = vsel %vm68_vm4, %v78_v30, %v66_v25 }
 0x16b   :  { %v73_v32 = vpop.permute.xlu1 %72  ;;  %v75_v33 = vpop.permute.xlu0 %74 }
 0x16c   :  { %v79_v34 = vmax.f32 %v67_v28, %v73_v32  ;;  %v84_v35 = vmax.f32 %v82_v31, %v75_v33 }
 0x16e   :  { %v83_v36 = vsel %vm68_vm4, %v79_v34, %v67_v28  ;;  %v88_v37 = vsel %vm69_vm5, %v84_v35, %v82_v31 }
 0x16f   :  { %v77_v38 = vpop.permute.xlu1 %76  ;;  %92 = vrot.lane.b32.xlu0 %v88_v37, %s142_s15 }
 0x170   :  { %v85_v39 = vmax.f32 %v83_v36, %v77_v38 }
 0x172   :  { %v89_v40 = vsel %vm69_vm5, %v85_v39, %v83_v36 }
 0x173   :  { %94 = vrot.lane.b32.xlu1 %v89_v40, %s142_s15  ;;  %96 = vrot.lane.b32.xlu0 %v88_v37, %s143_s16 }
 0x177   :  { %98 = vrot.lane.b32.xlu1 %v89_v40, %s143_s16 }
 0x1e1   :  { %v93_v41 = vpop.permute.xlu0 %92 }
 0x1e2   :  { %v100_v42 = vmax.f32 %v88_v37, %v93_v41 }
 0x1e4   :  { %v104_v43 = vsel %vm90_vm6, %v100_v42, %v88_v37 }
 0x1e5   :  { %v95_v44 = vpop.permute.xlu1 %94  ;;  %v97_v45 = vpop.permute.xlu0 %96 }
 0x1e6   :  { %v101_v46 = vmax.f32 %v89_v40, %v95_v44  ;;  %v106_v47 = vmax.f32 %v104_v43, %v97_v45 }
 0x1e8   :  { %v110_v48 = vsel %vm91_vm7, %v106_v47, %v104_v43  ;;  %v105_v49 = vsel %vm90_vm6, %v101_v46, %v89_v40 }
 0x1e9   :  { %v112_v50 = vsub.f32 %v157_v0, %v110_v48  ;;  %v99_v51 = vpop.permute.xlu1 %98 }
 0x1ea   :  { %v107_v52 = vmax.f32 %v105_v49, %v99_v51 }
 0x1eb   :  { %v114_v53 = vmul.f32 1.442695, %v112_v50 }
 0x1ec   :  { %v111_v54 = vsel %vm91_vm7, %v107_v52, %v105_v49 }
 0x1ed   :  { %132 = vpow2.f32 %v114_v53  ;;  %v113_v55 = vsub.f32 %v164_v1, %v111_v54 }
 0x1ef   :  { %v116_v56 = vmul.f32 1.442695, %v113_v55 }
 0x1f1   :  { %134 = vpow2.f32 %v116_v56 }
 0x1fa   :  { %v133_v57 = vpop.eup %132 }
 0x1fb   :  { %118 = vst [vmem:[%s191_s1] sm:$0xff] %v133_v57 }
 0x1fe   :  { %v135_v58 = vpop.eup %134 }
 0x1ff   :  { %119 = vst [vmem:[%s191_s1 + $0x8] sm:$0xff] %v135_v58 }

</bundles_post_ra>
